<compile_context>
chip_gen: v5e
topology: v5e:2x2
jax: 0.10.0
libtpu: 0.0.40
codegen_flags: <defaults>
</compile_context>

<pallas_src>
import jax
import jax.numpy as jnp
from jax.experimental import pallas as pl
from jax.experimental.pallas import tpu as pltpu

LANE = 128      # vreg lane width
SUBLANE = 8     # vreg sublane height (f32)


def _round_up(x, m):
    return (x + m - 1) // m * m


def make_fused_hybrid_kan_kernel(n_layers, n_bf):
    """Build the fused kernel body for a fixed (static) layer / basis count.

    Kernel refs (all whole-array blocks, no grid):
      refs[0]                 : x      VMEM (Bp, P)        padded input
      refs[1 + 3*l + 0]       : c_l    SMEM (nbf,)         contributions
      refs[1 + 3*l + 1]       : W_l    VMEM (nbf, P, P)    padded, pre-transposed
      refs[1 + 3*l + 2]       : b_l    VMEM (nbf, P)       padded bias
      refs[1 + 3*n_layers]    : out    VMEM (Bp, P)
    """

    def kernel(*refs):
        x_ref = refs[0]
        o_ref = refs[1 + 3 * n_layers]

        h = x_ref[...]                                   # (Bp, P) f32, stays on-chip
        for l in range(n_layers):                        # static unrolled layer loop
            c_ref = refs[1 + 3 * l + 0]
            w_ref = refs[1 + 3 * l + 1]
            b_ref = refs[1 + 3 * l + 2]

            # Fold the linear bases:  W_eff = sum_i c_i * W_i ,  b_eff = sum_i c_i * b_i
            w_eff = c_ref[0] * w_ref[0]                  # (P, P)
            b_eff = c_ref[0] * b_ref[0:1, :]             # (1, P), kept 2-D
            for i in range(1, n_bf):                     # static unrolled basis loop
                w_eff = w_eff + c_ref[i] * w_ref[i]
                b_eff = b_eff + c_ref[i] * b_ref[i:i + 1, :]

            # One MXU matmul per layer, f32 accumulation.
            h = jnp.dot(h, w_eff, preferred_element_type=jnp.float32) + b_eff

        o_ref[...] = h                                   # lane-dense, unmasked store

    return kernel


def hybrid_kan_forward(x, params):
    """Fused forward pass of the whole HybridKANbyLayer stack.

    x:      (B, In0) float32
    params: list of dicts per CustomHybridLayer with
              'contributions' (nbf,), 'w_t' (nbf, In, Out), 'b' (nbf, Out)
    returns (B, Out_last) float32
    """
    n_layers = len(params)
    n_bf = params[0]["contributions"].shape[0]

    B, in0 = x.shape
    dims = [in0] + [p["w_t"].shape[2] for p in params]
    P = _round_up(max(dims), LANE)          # common padded feature width (lane-dense)
    Bp = _round_up(B, SUBLANE)

    # Pad input to (Bp, P); zero padding is inert through zero-padded weights/biases.
    x_pad = jnp.zeros((Bp, P), jnp.float32).at[:B, :in0].set(x)

    flat_inputs = [x_pad]
    in_specs = [pl.BlockSpec(memory_space=pltpu.MemorySpace.VMEM)]
    for p in params:
        nbf, in_f, out_f = p["w_t"].shape
        w_pad = jnp.zeros((nbf, P, P), jnp.float32).at[:, :in_f, :out_f].set(p["w_t"])
        b_pad = jnp.zeros((nbf, P), jnp.float32).at[:, :out_f].set(p["b"])
        flat_inputs += [p["contributions"], w_pad, b_pad]
        in_specs += [
            pl.BlockSpec(memory_space=pltpu.MemorySpace.SMEM),   # contributions (nbf,)
            pl.BlockSpec(memory_space=pltpu.MemorySpace.VMEM),   # W (nbf, P, P)
            pl.BlockSpec(memory_space=pltpu.MemorySpace.VMEM),   # b (nbf, P)
        ]

    out_pad = pl.pallas_call(
        make_fused_hybrid_kan_kernel(n_layers, n_bf),
        out_shape=jax.ShapeDtypeStruct((Bp, P), jnp.float32),
        in_specs=in_specs,
        out_specs=pl.BlockSpec(memory_space=pltpu.MemorySpace.VMEM),
    )(*flat_inputs)

    out_last = params[-1]["w_t"].shape[2]
    return out_pad[:B, :out_last]


def init_hybrid_kan_params(key, layer_sizes, n_bf):
    """Deterministic parameter init mimicking nn.Linear's uniform init."""
    params = []
    for li in range(1, len(layer_sizes)):
        in_f, out_f = layer_sizes[li - 1], layer_sizes[li]
        bound = 1.0 / jnp.sqrt(jnp.float32(in_f))
        key, kw, kb = jax.random.split(key, 3)
        # PyTorch Linear weight is (out, in); store stacked then pre-transpose
        # to (n_bf, in, out) so the kernel matmul is plain x @ W.
        W = jax.random.uniform(kw, (n_bf, out_f, in_f), jnp.float32,
                               minval=-bound, maxval=bound)
        bvec = jax.random.uniform(kb, (n_bf, out_f), jnp.float32,
                                  minval=-bound, maxval=bound)
        contributions = jnp.full((n_bf,), 1.0 / n_bf, dtype=jnp.float32)
        params.append({
            "contributions": contributions,
            "w_t": jnp.transpose(W, (0, 2, 1)),
            "b": bvec,
        })
    return params


def hybrid_kan_reference(x, params):
    """Plain-JAX reference reproducing the PyTorch per-basis forward exactly."""
    for p in params:
        out = jnp.zeros((x.shape[0], p["w_t"].shape[2]), jnp.float32)
        for i in range(p["contributions"].shape[0]):
            out = out + p["contributions"][i] * (x @ p["w_t"][i] + p["b"][i])
        x = out
    return x


if __name__ == "__main__":
    # HybridKANbyLayer(layer_sizes=[16, 32, 8], basis_functions=['mlp','linear'])
    layer_sizes = [16, 32, 8]
    basis_functions = ["mlp", "linear"]    # both lower to nn.Linear
    n_bf = len(basis_functions)
    batch = 8

    key = jax.random.PRNGKey(0)
    key, kx = jax.random.split(key)
    x = jax.random.normal(kx, (batch, layer_sizes[0]), jnp.float32)

    params = init_hybrid_kan_params(key, layer_sizes, n_bf)

    fwd = jax.jit(hybrid_kan_forward)
    out = fwd(x, params)
    out = jax.block_until_ready(out)

    ref = hybrid_kan_reference(x, params)
    assert out.shape == (batch, layer_sizes[-1])
    assert jnp.allclose(out, ref, atol=1e-4, rtol=1e-4), "mismatch vs reference"

    print("KERNEL_OK")
</pallas_src>

<mosaic_0001>
module attributes {stable_mosaic.version = 11 : i64} {
  func.func @kernel(%arg0: memref<8x128xf32, #tpu.memory_space<vmem>>, %arg1: memref<2xf32, #tpu.memory_space<smem>>, %arg2: memref<2x128x128xf32, #tpu.memory_space<vmem>>, %arg3: memref<2x128xf32, #tpu.memory_space<vmem>>, %arg4: memref<2xf32, #tpu.memory_space<smem>>, %arg5: memref<2x128x128xf32, #tpu.memory_space<vmem>>, %arg6: memref<2x128xf32, #tpu.memory_space<vmem>>, %arg7: memref<8x128xf32, #tpu.memory_space<vmem>>) attributes {dimension_semantics = [], scalar_prefetch = 0 : i64, scratch_operands = 0 : i64, tpu.core_type = #tpu.core_type<tc>} {
    %c0 = arith.constant 0 : index
    %c0_0 = arith.constant 0 : index
    %0 = vector.load %arg0[%c0, %c0_0] : memref<8x128xf32, #tpu.memory_space<vmem>>, vector<8x128xf32>
    %c0_1 = arith.constant 0 : index
    %1 = memref.load %arg1[%c0_1] : memref<2xf32, #tpu.memory_space<smem>>
    %c0_2 = arith.constant 0 : index
    %c0_3 = arith.constant 0 : index
    %c0_4 = arith.constant 0 : index
    %2 = vector.load %arg2[%c0_2, %c0_3, %c0_4] : memref<2x128x128xf32, #tpu.memory_space<vmem>>, vector<1x128x128xf32>
    %3 = vector.shape_cast %2 : vector<1x128x128xf32> to vector<128x128xf32>
    %4 = vector.broadcast %1 : f32 to vector<128x128xf32>
    %5 = arith.mulf %4, %3 : vector<128x128xf32>
    %c0_5 = arith.constant 0 : index
    %6 = memref.load %arg1[%c0_5] : memref<2xf32, #tpu.memory_space<smem>>
    %c0_6 = arith.constant 0 : index
    %c0_7 = arith.constant 0 : index
    %7 = vector.load %arg3[%c0_6, %c0_7] : memref<2x128xf32, #tpu.memory_space<vmem>>, vector<1x128xf32>
    %8 = vector.broadcast %6 : f32 to vector<1x128xf32>
    %9 = arith.mulf %8, %7 : vector<1x128xf32>
    %c1 = arith.constant 1 : index
    %10 = memref.load %arg1[%c1] : memref<2xf32, #tpu.memory_space<smem>>
    %c1_8 = arith.constant 1 : index
    %c0_9 = arith.constant 0 : index
    %c0_10 = arith.constant 0 : index
    %11 = vector.load %arg2[%c1_8, %c0_9, %c0_10] : memref<2x128x128xf32, #tpu.memory_space<vmem>>, vector<1x128x128xf32>
    %12 = vector.shape_cast %11 : vector<1x128x128xf32> to vector<128x128xf32>
    %13 = vector.broadcast %10 : f32 to vector<128x128xf32>
    %14 = arith.mulf %13, %12 : vector<128x128xf32>
    %15 = arith.addf %5, %14 : vector<128x128xf32>
    %c1_11 = arith.constant 1 : index
    %16 = memref.load %arg1[%c1_11] : memref<2xf32, #tpu.memory_space<smem>>
    %c1_12 = arith.constant 1 : index
    %c0_13 = arith.constant 0 : index
    %17 = vector.load %arg3[%c1_12, %c0_13] : memref<2x128xf32, #tpu.memory_space<vmem>>, vector<1x128xf32>
    %18 = vector.broadcast %16 : f32 to vector<1x128xf32>
    %19 = arith.mulf %18, %17 : vector<1x128xf32>
    %20 = arith.addf %9, %19 : vector<1x128xf32>
    %cst = arith.constant dense<0.000000e+00> : vector<8x128xf32>
    %21 = tpu.matmul %0, %15, %cst {dimension_numbers = #tpu.dot_dimension_numbers<[1], [0], [0], [1], [0, 0, 1, 1], [], []>} : vector<8x128xf32>, vector<128x128xf32>, vector<8x128xf32> -> vector<8x128xf32>
    %22 = vector.broadcast %20 : vector<1x128xf32> to vector<8x128xf32>
    %23 = arith.addf %21, %22 : vector<8x128xf32>
    %c0_14 = arith.constant 0 : index
    %24 = memref.load %arg4[%c0_14] : memref<2xf32, #tpu.memory_space<smem>>
    %c0_15 = arith.constant 0 : index
    %c0_16 = arith.constant 0 : index
    %c0_17 = arith.constant 0 : index
    %25 = vector.load %arg5[%c0_15, %c0_16, %c0_17] : memref<2x128x128xf32, #tpu.memory_space<vmem>>, vector<1x128x128xf32>
    %26 = vector.shape_cast %25 : vector<1x128x128xf32> to vector<128x128xf32>
    %27 = vector.broadcast %24 : f32 to vector<128x128xf32>
    %28 = arith.mulf %27, %26 : vector<128x128xf32>
    %c0_18 = arith.constant 0 : index
    %29 = memref.load %arg4[%c0_18] : memref<2xf32, #tpu.memory_space<smem>>
    %c0_19 = arith.constant 0 : index
    %c0_20 = arith.constant 0 : index
    %30 = vector.load %arg6[%c0_19, %c0_20] : memref<2x128xf32, #tpu.memory_space<vmem>>, vector<1x128xf32>
    %31 = vector.broadcast %29 : f32 to vector<1x128xf32>
    %32 = arith.mulf %31, %30 : vector<1x128xf32>
    %c1_21 = arith.constant 1 : index
    %33 = memref.load %arg4[%c1_21] : memref<2xf32, #tpu.memory_space<smem>>
    %c1_22 = arith.constant 1 : index
    %c0_23 = arith.constant 0 : index
    %c0_24 = arith.constant 0 : index
    %34 = vector.load %arg5[%c1_22, %c0_23, %c0_24] : memref<2x128x128xf32, #tpu.memory_space<vmem>>, vector<1x128x128xf32>
    %35 = vector.shape_cast %34 : vector<1x128x128xf32> to vector<128x128xf32>
    %36 = vector.broadcast %33 : f32 to vector<128x128xf32>
    %37 = arith.mulf %36, %35 : vector<128x128xf32>
    %38 = arith.addf %28, %37 : vector<128x128xf32>
    %c1_25 = arith.constant 1 : index
    %39 = memref.load %arg4[%c1_25] : memref<2xf32, #tpu.memory_space<smem>>
    %c1_26 = arith.constant 1 : index
    %c0_27 = arith.constant 0 : index
    %40 = vector.load %arg6[%c1_26, %c0_27] : memref<2x128xf32, #tpu.memory_space<vmem>>, vector<1x128xf32>
    %41 = vector.broadcast %39 : f32 to vector<1x128xf32>
    %42 = arith.mulf %41, %40 : vector<1x128xf32>
    %43 = arith.addf %32, %42 : vector<1x128xf32>
    %cst_28 = arith.constant dense<0.000000e+00> : vector<8x128xf32>
    %44 = tpu.matmul %23, %38, %cst_28 {dimension_numbers = #tpu.dot_dimension_numbers<[1], [0], [0], [1], [0, 0, 1, 1], [], []>} : vector<8x128xf32>, vector<128x128xf32>, vector<8x128xf32> -> vector<8x128xf32>
    %45 = vector.broadcast %43 : vector<1x128xf32> to vector<8x128xf32>
    %46 = arith.addf %44, %45 : vector<8x128xf32>
    %c0_29 = arith.constant 0 : index
    %c0_30 = arith.constant 0 : index
    %47 = vector.load %arg7[%c0_29, %c0_30] : memref<8x128xf32, #tpu.memory_space<vmem>>, vector<8x128xf32>
    tpu.vector_store %arg7[%c0_29, %c0_30], %46 {strides = array<i32>} : memref<8x128xf32, #tpu.memory_space<vmem>>, vector<8x128xf32>,
    return
  }
}

</mosaic_0001>

<bundles_post_ra>
// kernel: hybrid_kan_forward.1
= control target key start
LH: loop header
LB: loop body
LE: loop exit
PB: predicated region body
PF: predicated region fallthrough
CT: control target
= control target key end

     0   :  { %12 = vsyncpa [#allocation4], 0  ;;  %s726_s0 = inlined_call_operand.vmem [shape: f32[8,128], index: 0, kind: input, shape index: {}]   ;;  %s727_s1 = inlined_call_operand.vmem [shape: f32[2], index: 1, kind: input, shape index: {}]   ;;  %s728_s2 = inlined_call_operand.vmem [shape: f32[2,128,128], index: 2, kind: input, shape index: {}]   ;;  %s729_s3 = inlined_call_operand.vmem [shape: f32[2,128], index: 3, kind: input, shape index: {}]   ;;  %s730_s4 = inlined_call_operand.vmem [shape: f32[2], index: 4, kind: input, shape index: {}]   ;;  %s731_s5 = inlined_call_operand.vmem [shape: f32[2,128,128], index: 5, kind: input, shape index: {}]   ;;  %s732_s6 = inlined_call_operand.vmem [shape: f32[2,128], index: 6, kind: input, shape index: {}]   ;;  %s733_s7 = inlined_call_operand.hbm [shape: f32[8,128], index: 7, kind: output, shape index: {}]  }
   0x1   :  { %13 = vsyncpa [#allocation6], 0 }
   0x2   :  { %14 = vsyncpa [#allocation3], 0  ;;  %s22_s26 = sshll.u32 %s727_s1, 4  ;;  %s35_s29 = sshll.u32 %s730_s4, 4  ;;  %s23_s26 = int_to_ptr.vmem [resolvable:$true] %s22_s26  ;;  %s36_s29 = int_to_ptr.vmem [resolvable:$true] %s35_s29 }
   0x3   :  { %s385_s30 = smov [#allocation2]   ;;  %s386_s8 = smov [#allocation5]  }
   0x4   :  { %25 = dma.vmem_to_smem %s23_s26, 16, %s385_s30, [#allocation4]  }
   0x5   :  { %38 = dma.vmem_to_smem %s36_s29, 16, %s386_s8, [#allocation6]  }
   0x6   :  { %379 = dma.done.wait [#allocation4], 16  }
   0x7   :  { %380 = vsyncadd [#allocation4], 4294967280 }
   0x8   :  { %381 = dma.done.wait [#allocation6], 16  }
   0x9   :  { %382 = vsyncadd [#allocation6], 4294967280 }
   0xa   :  { %51 = sfence }
   0xb   :  { %s53_s9 = sld [smem:[#allocation2]]  ;;  %v69_v0 = vld [vmem:[%s728_s2 + $0x78] sm:$0xff]  ;;  %v68_v2 = vld [vmem:[%s728_s2 + $0x70] sm:$0xff]  ;;  %v67_v4 = vld [vmem:[%s728_s2 + $0x68] sm:$0xff]  ;;  %s283_s22 = sshll.u32 %s733_s7, 4  ;;  %s284_s22 = int_to_ptr.hbm [resolvable:$true] %s283_s22 }
   0xc   :  { %s294_s10 = sld [smem:[#allocation2 + $0x1]]  ;;  %v310_v1 = vld [vmem:[%s728_s2 + $0xf8] sm:$0xff]  ;;  %v309_v3 = vld [vmem:[%s728_s2 + $0xf0] sm:$0xff]  ;;  %v308_v5 = vld [vmem:[%s728_s2 + $0xe8] sm:$0xff] }
   0xd   :  { %v66_v10 = vld [vmem:[%s728_s2 + $0x60] sm:$0xff]  ;;  %v65_v16 = vld [vmem:[%s728_s2 + $0x58] sm:$0xff]  ;;  %s476_s29 = sld [smem:[#allocation5]]  ;;  %v64_v22 = vld [vmem:[%s728_s2 + $0x50] sm:$0xff] }
   0xe   :  { %v307_v11 = vld [vmem:[%s728_s2 + $0xe0] sm:$0xff]  ;;  %v306_v17 = vld [vmem:[%s728_s2 + $0xd8] sm:$0xff]  ;;  %v305_v23 = vld [vmem:[%s728_s2 + $0xd0] sm:$0xff]  ;;  %s484_s11 = sld [smem:[#allocation5 + $0x1]] }
   0xf   :  { %v63_v27 = vld [vmem:[%s728_s2 + $0x48] sm:$0xff]  ;;  %v62_v32 = vld [vmem:[%s728_s2 + $0x40] sm:$0xff]  ;;  %v61_v34 = vld [vmem:[%s728_s2 + $0x38] sm:$0xff] }
  0x10   :  { %v304_v28 = vld [vmem:[%s728_s2 + $0xc8] sm:$0xff]  ;;  %v303_v33 = vld [vmem:[%s728_s2 + $0xc0] sm:$0xff]  ;;  %v302_v38 = vld [vmem:[%s728_s2 + $0xb8] sm:$0xff] }
  0x11   :  { %v452_v6 = vstv %s53_s9  ;;  %v180_v39 = vld [vmem:[%s731_s5 + $0x78] sm:$0xff]  ;;  %v179_v40 = vld [vmem:[%s731_s5 + $0x70] sm:$0xff]  ;;  %v178_v45 = vld [vmem:[%s731_s5 + $0x68] sm:$0xff] }
  0x12   :  { %v86_v7 = vmul.f32 %v452_v6, %v69_v0  ;;  %v455_v8 = vstv %s294_s10  ;;  %v85_v9 = vmul.f32 %v452_v6, %v68_v2  ;;  %v84_v14 = vmul.f32 %v452_v6, %v67_v4  ;;  %v327_v43 = vld [vmem:[%s731_s5 + $0xf8] sm:$0xff]  ;;  %v326_v44 = vld [vmem:[%s731_s5 + $0xf0] sm:$0xff]  ;;  %v325_v51 = vld [vmem:[%s731_s5 + $0xe8] sm:$0xff] }
  0x13   :  { %v123_v12 = vmul.f32 %v310_v1, %v455_v8  ;;  %v122_v13 = vmul.f32 %v309_v3, %v455_v8  ;;  %v121_v15 = vmul.f32 %v308_v5, %v455_v8  ;;  %v83_v20 = vmul.f32 %v452_v6, %v66_v10  ;;  %v60_v48 = vld [vmem:[%s728_s2 + $0x30] sm:$0xff]  ;;  %v177_v56 = vld [vmem:[%s731_s5 + $0x60] sm:$0xff]  ;;  %v59_v59 = vld [vmem:[%s728_s2 + $0x28] sm:$0xff] }
  0x14   :  { %v120_v21 = vmul.f32 %v307_v11, %v455_v8  ;;  %v82_v25 = vmul.f32 %v452_v6, %v65_v16  ;;  %v119_v26 = vmul.f32 %v306_v17, %v455_v8  ;;  %v81_v30 = vmul.f32 %v452_v6, %v64_v22  ;;  %v301_v49 = vld [vmem:[%s728_s2 + $0xb0] sm:$0xff]  ;;  %v324_v57 = vld [vmem:[%s731_s5 + $0xe0] sm:$0xff]  ;;  %v300_v60 = vld [vmem:[%s728_s2 + $0xa8] sm:$0xff] }
  0x15   :  { %v139_v18 = vadd.f32 %v123_v12, %v86_v7  ;;  %v138_v19 = vadd.f32 %v122_v13, %v85_v9  ;;  %v137_v24 = vadd.f32 %v121_v15, %v84_v14  ;;  %v118_v31 = vmul.f32 %v305_v23, %v455_v8  ;;  %v176_v4 = vld [vmem:[%s731_s5 + $0x58] sm:$0xff]  ;;  %v58_v7 = vld [vmem:[%s728_s2 + $0x20] sm:$0xff]  ;;  %v175_v17 = vld [vmem:[%s731_s5 + $0x50] sm:$0xff] }
  0x16   :  { %v136_v29 = vadd.f32 %v120_v21, %v83_v20  ;;  %v135_v35 = vadd.f32 %v119_v26, %v82_v25  ;;  %v80_v36 = vmul.f32 %v452_v6, %v63_v27  ;;  %v117_v37 = vmul.f32 %v304_v28, %v455_v8  ;;  %v323_v5 = vld [vmem:[%s731_s5 + $0xd8] sm:$0xff]  ;;  %v299_v9 = vld [vmem:[%s728_s2 + $0xa0] sm:$0xff]  ;;  %v174_v27 = vld [vmem:[%s731_s5 + $0x48] sm:$0xff] }
  0x17   :  { %144 = vmatpush.msra.mxu0 %v139_v18  ;;  %v79_v41 = vmul.f32 %v452_v6, %v62_v32  ;;  %v116_v42 = vmul.f32 %v303_v33, %v455_v8  ;;  %v134_v46 = vadd.f32 %v118_v31, %v81_v30  ;;  %v78_v47 = vmul.f32 %v452_v6, %v61_v34  ;;  %v322_v18 = vld [vmem:[%s731_s5 + $0xd0] sm:$0xff]  ;;  %v298_v20 = vld [vmem:[%s728_s2 + $0x98] sm:$0xff]  ;;  %v321_v28 = vld [vmem:[%s731_s5 + $0xc8] sm:$0xff] }
  0x18   :  { %v535_v50 = vstv %s476_s29  ;;  %v115_v52 = vmul.f32 %v302_v38, %v455_v8  ;;  %v543_v54 = vstv %s484_s11  ;;  %v133_v58 = vadd.f32 %v117_v37, %v80_v36  ;;  %v297_v30 = vld [vmem:[%s728_s2 + $0x90] sm:$0xff]  ;;  %v173_v34 = vld [vmem:[%s731_s5 + $0x40] sm:$0xff] }
  0x19   :  { %145 = vmatpush.msra.mxu0 %v138_v19  ;;  %v197_v53 = vmul.f32 %v535_v50, %v180_v39  ;;  %v196_v55 = vmul.f32 %v535_v50, %v179_v40  ;;  %v234_v61 = vmul.f32 %v327_v43, %v543_v54  ;;  %v233_v62 = vmul.f32 %v326_v44, %v543_v54  ;;  %v57_v19 = vld [vmem:[%s728_s2 + $0x18] sm:$0xff]  ;;  %v320_v38 = vld [vmem:[%s731_s5 + $0xc0] sm:$0xff]  ;;  %v55_v40 = vld [vmem:[%s728_s2 + $0x8] sm:$0xff] }
  0x1a   :  { %v195_v63 = vmul.f32 %v535_v50, %v178_v45  ;;  %v132_v0 = vadd.f32 %v116_v42, %v79_v41  ;;  %v77_v1 = vmul.f32 %v452_v6, %v60_v48  ;;  %v114_v2 = vmul.f32 %v301_v49, %v455_v8  ;;  %v87_v39 = vld [vmem:[%s729_s3] sm:$0x1]  ;;  %v296_v41 = vld [vmem:[%s728_s2 + $0x88] sm:$0xff]  ;;  %v140_v45 = vld [vmem:[%s729_s3 + $0x1] sm:$0x1] }
  0x1b   :  { %146 = vmatpush.msra.mxu0 %v137_v24  ;;  %v232_v3 = vmul.f32 %v325_v51, %v543_v54  ;;  %v250_v10 = vadd.f32 %v234_v61, %v197_v53  ;;  %v249_v11 = vadd.f32 %v233_v62, %v196_v55  ;;  %v194_v12 = vmul.f32 %v535_v50, %v177_v56  ;;  %v172_v51 = vld [vmem:[%s731_s5 + $0x38] sm:$0xff]  ;;  %v54_v53 = vld [vmem:[%s728_s2] sm:$0xff]  ;;  %v171_v62 = vld [vmem:[%s731_s5 + $0x30] sm:$0xff] }
  0x1c   :  { %v231_v13 = vmul.f32 %v324_v57, %v543_v54  ;;  %v131_v14 = vadd.f32 %v115_v52, %v78_v47  ;;  %v76_v15 = vmul.f32 %v452_v6, %v59_v59  ;;  %v113_v16 = vmul.f32 %v300_v60, %v455_v8  ;;  %v319_v52 = vld [vmem:[%s731_s5 + $0xb8] sm:$0xff]  ;;  %v295_v55 = vld [vmem:[%s728_s2 + $0x80] sm:$0xff] }
  0x1d   :  { %147 = vmatpush.msra.mxu0 %v136_v29  ;;  %255 = vmatpush.msra.mxu1 %v250_v10  ;;  %v248_v21 = vadd.f32 %v232_v3, %v195_v63  ;;  %v193_v22 = vmul.f32 %v535_v50, %v176_v4  ;;  %v230_v23 = vmul.f32 %v323_v5, %v543_v54  ;;  %v56_v29 = vld [vmem:[%s728_s2 + $0x10] sm:$0xff]  ;;  %v317_v10 = vld [vmem:[%s731_s5 + $0xa8] sm:$0xff] }
  0x1e   :  { %v130_v24 = vadd.f32 %v114_v2, %v77_v1  ;;  %v75_v25 = vmul.f32 %v452_v6, %v58_v7  ;;  %v112_v26 = vmul.f32 %v299_v9, %v455_v8  ;;  %v247_v31 = vadd.f32 %v231_v13, %v194_v12  ;;  %v318_v63 = vld [vmem:[%s731_s5 + $0xb0] sm:$0xff]  ;;  %v170_v9 = vld [vmem:[%s731_s5 + $0x28] sm:$0xff] }
  0x1f   :  { %148 = vmatpush.msra.mxu0 %v135_v35  ;;  %256 = vmatpush.msra.mxu1 %v249_v11  ;;  %v192_v32 = vmul.f32 %v535_v50, %v175_v17  ;;  %v229_v33 = vmul.f32 %v322_v18, %v543_v54  ;;  %v129_v35 = vadd.f32 %v113_v16, %v76_v15 }
  0x20   :  { %v74_v36 = vmul.f32 %v452_v6, %v57_v19  ;;  %v111_v37 = vmul.f32 %v298_v20, %v455_v8  ;;  %v246_v42 = vadd.f32 %v230_v23, %v193_v22  ;;  %v191_v43 = vmul.f32 %v535_v50, %v174_v27  ;;  %v168_v20 = vld [vmem:[%s731_s5 + $0x18] sm:$0xff]  ;;  %v52_v27 = vld [vmem:[%s726_s0] sm:$0xff] }
  0x21   :  { %149 = vmatpush.msra.mxu0 %v134_v46  ;;  %257 = vmatpush.msra.mxu1 %v248_v21  ;;  %v228_v44 = vmul.f32 %v321_v28, %v543_v54  ;;  %v128_v46 = vadd.f32 %v112_v26, %v75_v25  ;;  %v73_v47 = vmul.f32 %v452_v6, %v56_v29  ;;  %v315_v21 = vld [vmem:[%s731_s5 + $0x98] sm:$0xff]  ;;  %v167_v25 = vld [vmem:[%s731_s5 + $0x10] sm:$0xff] }
  0x22   :  { %v110_v48 = vmul.f32 %v297_v30, %v455_v8  ;;  %v190_v49 = vmul.f32 %v535_v50, %v173_v34  ;;  %v245_v56 = vadd.f32 %v229_v33, %v192_v32  ;;  %v227_v57 = vmul.f32 %v320_v38, %v543_v54  ;;  %v314_v26 = vld [vmem:[%s731_s5 + $0x90] sm:$0xff] }
  0x23   :  { %150 = vmatpush.msra.mxu0 %v133_v58  ;;  %258 = vmatpush.msra.mxu1 %v247_v31  ;;  %v88_v58 = vmul.f32 %v87_v39, %v452_v6  ;;  %v127_v59 = vadd.f32 %v111_v37, %v74_v36  ;;  %v72_v60 = vmul.f32 %v452_v6, %v55_v40  ;;  %v166_v36 = vld [vmem:[%s731_s5 + $0x8] sm:$0xff]  ;;  %v165_v40 = vld [vmem:[%s731_s5] sm:$0xff] }
  0x24   :  { %v109_v61 = vmul.f32 %v296_v41, %v455_v8  ;;  %v244_v1 = vadd.f32 %v228_v44, %v191_v43  ;;  %v189_v2 = vmul.f32 %v535_v50, %v172_v51  ;;  %v226_v3 = vmul.f32 %v319_v52, %v543_v54  ;;  %v313_v37 = vld [vmem:[%s731_s5 + $0x88] sm:$0xff]  ;;  %v312_v41 = vld [vmem:[%s731_s5 + $0x80] sm:$0xff] }
  0x25   :  { %151 = vmatpush.msra.mxu0 %v132_v0  ;;  %v141_v0 = vmul.f32 %v140_v45, %v455_v8  ;;  %259 = vmatpush.msra.mxu1 %v246_v42  ;;  %v126_v4 = vadd.f32 %v110_v48, %v73_v47  ;;  %v71_v5 = vmul.f32 %v452_v6, %v54_v53  ;;  %v169_v6 = vld [vmem:[%s731_s5 + $0x20] sm:$0xff] }
  0x26   :  { %v108_v7 = vmul.f32 %v295_v55, %v455_v8  ;;  %v243_v12 = vadd.f32 %v227_v57, %v190_v49  ;;  %v188_v13 = vmul.f32 %v535_v50, %v171_v62  ;;  %v125_v15 = vadd.f32 %v109_v61, %v72_v60  ;;  %v316_v8 = vld [vmem:[%s731_s5 + $0xa0] sm:$0xff]  ;;  %s387_s5 = smov [#allocation7]  }
  0x27   :  { %152 = vmatpush.msra.mxu0 %v131_v14  ;;  %v142_v11 = vadd.f32 %v141_v0, %v88_v58  ;;  %260 = vmatpush.msra.mxu1 %v245_v56  ;;  %v225_v14 = vmul.f32 %v318_v63, %v543_v54  ;;  %v242_v16 = vadd.f32 %v226_v3, %v189_v2  ;;  %v198_v49 = vld [vmem:[%s732_s6] sm:$0x1]  ;;  %v251_v51 = vld [vmem:[%s732_s6 + $0x1] sm:$0x1]  ;;  %s281_s20 = sshll.u32 %s387_s5, 4  ;;  %s282_s20 = int_to_ptr.vmem [resolvable:$true] %s281_s20 }
  0x28   :  { %v187_v17 = vmul.f32 %v535_v50, %v170_v9  ;;  %v224_v18 = vmul.f32 %v317_v10, %v543_v54  ;;  %v124_v19 = vadd.f32 %v108_v7, %v71_v5  ;;  %v186_v23 = vmul.f32 %v535_v50, %v169_v6 }
  0x29   :  { %153 = vmatpush.msra.mxu0 %v130_v24  ;;  %261 = vmatpush.msra.mxu1 %v244_v1  ;;  %v241_v22 = vadd.f32 %v225_v14, %v188_v13  ;;  %v223_v24 = vmul.f32 %v316_v8, %v543_v54  ;;  %v185_v29 = vmul.f32 %v535_v50, %v168_v20 }
  0x2a   :  { %v240_v28 = vadd.f32 %v224_v18, %v187_v17  ;;  %v222_v30 = vmul.f32 %v315_v21, %v543_v54  ;;  %v184_v32 = vmul.f32 %v535_v50, %v167_v25  ;;  %v221_v33 = vmul.f32 %v314_v26, %v543_v54 }
  0x2b   :  { %154 = vmatpush.msra.mxu0 %v129_v35  ;;  %262 = vmatpush.msra.mxu1 %v243_v12  ;;  %v239_v31 = vadd.f32 %v223_v24, %v186_v23  ;;  %v183_v38 = vmul.f32 %v535_v50, %v166_v36  ;;  %v220_v39 = vmul.f32 %v313_v37, %v543_v54 }
  0x2c   :  { %v238_v34 = vadd.f32 %v222_v30, %v185_v29  ;;  %v237_v35 = vadd.f32 %v221_v33, %v184_v32  ;;  %v182_v43 = vmul.f32 %v535_v50, %v165_v40  ;;  %v219_v44 = vmul.f32 %v312_v41, %v543_v54 }
  0x2d   :  { %155 = vmatpush.msra.mxu0 %v128_v46  ;;  %263 = vmatpush.msra.mxu1 %v242_v16  ;;  %v236_v42 = vadd.f32 %v220_v39, %v183_v38  ;;  %v143_v46 = vperm.slane %v142_v11, 0  ;;  %v199_v52 = vmul.f32 %v198_v49, %v535_v50  ;;  %v252_v53 = vmul.f32 %v251_v51, %v543_v54 }
  0x2e   :  { %v235_v45 = vadd.f32 %v219_v44, %v182_v43 }
  0x2f   :  { %156 = vmatpush.msra.mxu0 %v127_v59  ;;  %264 = vmatpush.msra.mxu1 %v241_v22  ;;  %v253_v55 = vadd.f32 %v252_v53, %v199_v52 }
  0x31   :  { %157 = vmatpush.msra.mxu0 %v126_v4  ;;  %265 = vmatpush.msra.mxu1 %v240_v28  ;;  %v254_v56 = vperm.slane %v253_v55, 0 }
  0x33   :  { %158 = vmatpush.msra.mxu0 %v125_v15  ;;  %266 = vmatpush.msra.mxu1 %v239_v31 }
  0x35   :  { %159 = vmatpush.msra.mxu0 %v124_v19  ;;  %267 = vmatpush.msra.mxu1 %v238_v34 }
  0x36   :  { %160 = vmatmul.f32.vlgmr.msra.gmra.mxu0 %v52_v27 }
  0x37   :  { %268 = vmatpush.msra.mxu1 %v237_v35 }
  0x39   :  { %269 = vmatpush.msra.mxu1 %v236_v42 }
  0x3b   :  { %270 = vmatpush.msra.mxu1 %v235_v45 }
  0xb3   :  { %v161_v47 = vpop.f32.mrf.mxu0 }
  0xb4   :  { %v162_v48 = vadd.f32 %v161_v47, %v143_v46 }
  0xb6   :  { %271 = vmatmul.f32.vlgmr.msra.gmra.mxu1 %v162_v48 }
 0x133   :  { %v272_v57 = vpop.f32.mrf.mxu1 }
 0x134   :  { %v273_v58 = vadd.f32 %v272_v57, %v254_v56 }
 0x136   :  { %275 = vst [vmem:[#allocation7] sm:$0xff] %v273_v58 }
 0x137   :  { %286 = dma.vmem_to_hbm [thread:$0]  %s282_s20, 128, %s284_s22, [#allocation3]  }
 0x138   :  { %383 = dma.done.wait [#allocation3], 128  }
 0x139   :  { %384 = vsyncadd [#allocation3], 4294967168 }
 0x13a   :  { %291 = vsyncpa [#allocation3], 1 }
 0x13b   :  { %292 = vsyncpa [#allocation4], 1 }
 0x13c   :  { %293 = vsyncpa [#allocation6], 1 }

</bundles_post_ra>
